<compile_context>
chip_gen: v7x
topology: tpu7x:2x2x1
jax: 0.10.0
libtpu: 0.0.40
codegen_flags: <defaults>
</compile_context>

<pallas_src>
import functools

import jax
import jax.numpy as jnp
import numpy as np
from jax.experimental import pallas as pl
from jax.experimental.pallas import tpu as pltpu

NEG_SLOPE = 0.3   # must stay >= 0: "LeakyReLU after max-pool" relies on monotonicity
KSIZE = 3
C_OUT = 5
POOL_OUT = 10
N_CLASSES = 3


def _pool_windows(l_in: int, l_out: int):
    """Static (start, end) bounds matching torch AdaptiveMaxPool1d."""
    return [((i * l_in) // l_out, -((-(i + 1) * l_in) // l_out))
            for i in range(l_out)]


def _candidate_selectors(l_in: int, l_conv: int):
    """Static 0/1 selector S[j, i, l, k] used to build the Toeplitz candidates.

    For pooled index i and candidate j the selected conv position is
    p = min(start_i + j, end_i - 1) (short windows duplicate their last element, which
    is a no-op under max); S places the k-th conv tap at input column p + k.
    Returns (S, n_cand), S of shape (n_cand, POOL_OUT, l_in + 1, KSIZE).
    """
    windows = _pool_windows(l_conv, POOL_OUT)
    n_cand = max(e - s for s, e in windows)
    S = np.zeros((n_cand, POOL_OUT, l_in + 1, KSIZE), np.float32)
    for j in range(n_cand):
        for i, (s, e) in enumerate(windows):
            p = min(s + j, e - 1)
            for k in range(KSIZE):
                S[j, i, p + k, k] = 1.0
    return S, n_cand


@functools.partial(jax.jit, static_argnames=("tb",))
def simple_conv_encoder(x, w1, b1, wo, bo, *, tb=None):
    """x: (B, L) f32; w1: (5,3) conv weight (out_ch, k); b1: (5,);
    wo: (50,3) (= torch Linear weight.T); bo: (3,)."""
    B, L = x.shape
    Lc = L - KSIZE + 1
    F = C_OUT * POOL_OUT                              # 50

    # ---- batch tiling (batch on lanes) ----
    if tb is None:
        if B <= 1024:
            tb = B                                    # demo-sized: one full-array block
        else:
            # Big lane-dense tiles, >= 2 blocks so both v7x TensorCores get work,
            # capped at 8192 so double-buffered tiles + (50, TB) intermediates stay
            # comfortably inside scoped VMEM on v5e / v7x.
            tb = min(8192, 128 * pl.cdiv(pl.cdiv(B, 2), 128))
    nblk = pl.cdiv(B, tb)
    if nblk > 1 and tb % 128 != 0:
        raise ValueError("tb must be a multiple of 128 when the batch is tiled")
    Bp = nblk * tb

    # ---- input prep: (L+1, Bp), last row == 1 so the conv bias folds into the matmul ----
    # TODO(synk): for large B produce x as (L, B) upstream; this XLA transpose is an
    # extra HBM pass over the input once the kernel itself is HBM-bound.
    xTa = jnp.concatenate([jnp.transpose(x).astype(jnp.float32),
                           jnp.ones((1, B), jnp.float32)], axis=0)        # (L+1, B)
    if Bp != B:
        xTa = jnp.pad(xTa, ((0, 0), (0, Bp - B)))

    # ---- build the Toeplitz "window-candidate" matrices (tiny, jit-fused) ----
    S, n_cand = _candidate_selectors(L, Lc)
    # T[j, c, i, l] = sum_k S[j, i, l, k] * w1[c, k]; conv bias lives in column L.
    T = jnp.einsum("jilk,ck->jcil", jnp.asarray(S), w1.astype(jnp.float32))
    T = T.at[:, :, :, L].set(
        jnp.broadcast_to(b1.astype(jnp.float32)[None, :, None],
                         (n_cand, C_OUT, POOL_OUT)))
    T = T.reshape(n_cand, F, L + 1)                                       # (n_cand, 50, L+1)

    woT = jnp.transpose(wo).astype(jnp.float32)                           # (3, 50)
    bo2 = bo.reshape(N_CLASSES, 1).astype(jnp.float32)                    # (3, 1)

    def encoder_kernel(xT_ref, t_ref, woT_ref, bo_ref, o_ref):
        # xT_ref : (L+1, TB) f32 VMEM  -- batch on lanes, last row == 1 (bias column)
        # t_ref  : (n_cand, 50, L+1)   -- Toeplitz conv+pool candidates (bias folded)
        # woT_ref: (3, 50), bo_ref: (3, 1), o_ref: (3, TB)
        xT = xT_ref[...]
        # Conv1d (+ bias) and adaptive max-pool: MXU matmuls + elementwise max.
        m = jnp.dot(t_ref[0], xT, preferred_element_type=jnp.float32)     # (50, TB)
        for j in range(1, n_cand):
            m = jnp.maximum(
                m, jnp.dot(t_ref[j], xT, preferred_element_type=jnp.float32))
        a = jnp.maximum(m, NEG_SLOPE * m)      # LeakyReLU(0.3) after pool (monotone)
        # Linear(50, 3): lane-dense (3, TB) output.
        o_ref[...] = jnp.dot(woT_ref[...], a,
                             preferred_element_type=jnp.float32) + bo_ref[...]

    out = pl.pallas_call(
        encoder_kernel,
        out_shape=jax.ShapeDtypeStruct((N_CLASSES, Bp), jnp.float32),
        grid=(nblk,),
        in_specs=[
            pl.BlockSpec((L + 1, tb), lambda i: (0, i)),            # xTa batch tile
            pl.BlockSpec((n_cand, F, L + 1), lambda i: (0, 0, 0)),  # Toeplitz candidates
            pl.BlockSpec((N_CLASSES, F), lambda i: (0, 0)),         # Linear weight
            pl.BlockSpec((N_CLASSES, 1), lambda i: (0, 0)),         # Linear bias
        ],
        out_specs=pl.BlockSpec((N_CLASSES, tb), lambda i: (0, i)),
        compiler_params=pltpu.CompilerParams(
            dimension_semantics=("parallel",),
            vmem_limit_bytes=32 * 1024 * 1024),
    )(xTa, T, woT, bo2)

    return jnp.transpose(out[:, :B])                                # (B, 3)


def reference(x, w1, b1, wo, bo):
    """Pure numpy reference reproducing the PyTorch forward."""
    x = np.asarray(x); w1 = np.asarray(w1); b1 = np.asarray(b1)
    wo = np.asarray(wo); bo = np.asarray(bo)
    B, L = x.shape
    Lc = L - KSIZE + 1
    y = np.zeros((B, C_OUT, Lc), np.float32)
    for b in range(B):
        for c in range(C_OUT):
            for t in range(Lc):
                y[b, c, t] = np.dot(w1[c], x[b, t:t + KSIZE]) + b1[c]
    y = np.where(y > 0, y, NEG_SLOPE * y)
    pooled = np.zeros((B, C_OUT, POOL_OUT), np.float32)
    for i, (s, e) in enumerate(_pool_windows(Lc, POOL_OUT)):
        pooled[:, :, i] = y[:, :, s:e].max(axis=-1)
    flat = pooled.reshape(B, -1)
    return flat @ wo + bo


if __name__ == "__main__":
    key = jax.random.PRNGKey(0)
    k_x, k_w1, k_b1, k_wo, k_bo = jax.random.split(key, 5)

    B, L = 2, 16                       # input: (batch=2, length=16)
    x = jax.random.normal(k_x, (B, L), jnp.float32)

    # Deterministic synthetic parameters (shapes from the module's __init__).
    w1 = 0.3 * jax.random.normal(k_w1, (C_OUT, KSIZE), jnp.float32)   # Conv1d weight (5,1,3) squeezed
    b1 = 0.1 * jax.random.normal(k_b1, (C_OUT,), jnp.float32)         # Conv1d bias
    wo = 0.2 * jax.random.normal(k_wo, (C_OUT * POOL_OUT, N_CLASSES), jnp.float32)  # Linear.weight.T
    bo = 0.1 * jax.random.normal(k_bo, (N_CLASSES,), jnp.float32)     # Linear bias

    out = jax.block_until_ready(simple_conv_encoder(x, w1, b1, wo, bo))

    ref = reference(x, w1, b1, wo, bo)
    np.testing.assert_allclose(np.asarray(out), ref, rtol=1e-4, atol=1e-4)
    print("KERNEL_OK")
</pallas_src>

<mosaic_0001>
module attributes {stable_mosaic.version = 11 : i64} {
  func.func @encoder_kernel(%arg0: i32, %arg1: memref<17x2xf32, #tpu.memory_space<vmem>>, %arg2: memref<3x50x17xf32, #tpu.memory_space<vmem>>, %arg3: memref<3x50xf32, #tpu.memory_space<vmem>>, %arg4: memref<3x1xf32, #tpu.memory_space<vmem>>, %arg5: memref<3x2xf32, #tpu.memory_space<vmem>>) attributes {dimension_semantics = [#tpu.dimension_semantics<parallel>], iteration_bounds = array<i64: 1>, scalar_prefetch = 0 : i64, scratch_operands = 0 : i64, tpu.core_type = #tpu.core_type<tc>, window_params = [{transform_indices = @transform_0, window_bounds = array<i64: 17, 2>}, {pipeline_mode = #tpu.pipeline_mode<synchronous>, transform_indices = @transform_1, window_bounds = array<i64: 3, 50, 17>}, {pipeline_mode = #tpu.pipeline_mode<synchronous>, transform_indices = @transform_2, window_bounds = array<i64: 3, 50>}, {pipeline_mode = #tpu.pipeline_mode<synchronous>, transform_indices = @transform_3, window_bounds = array<i64: 3, 1>}, {transform_indices = @transform_4, window_bounds = array<i64: 3, 2>}]} {
    %c0 = arith.constant 0 : index
    %c0_0 = arith.constant 0 : index
    %0 = vector.load %arg1[%c0, %c0_0] : memref<17x2xf32, #tpu.memory_space<vmem>>, vector<17x2xf32>
    %c0_1 = arith.constant 0 : index
    %c0_2 = arith.constant 0 : index
    %c0_3 = arith.constant 0 : index
    %1 = vector.load %arg2[%c0_1, %c0_2, %c0_3] : memref<3x50x17xf32, #tpu.memory_space<vmem>>, vector<1x50x17xf32>
    %2 = vector.shape_cast %1 : vector<1x50x17xf32> to vector<50x17xf32>
    %cst = arith.constant dense<0.000000e+00> : vector<50x2xf32>
    %3 = tpu.matmul %2, %0, %cst {dimension_numbers = #tpu.dot_dimension_numbers<[1], [0], [0], [1], [0, 0, 1, 1], [], []>} : vector<50x17xf32>, vector<17x2xf32>, vector<50x2xf32> -> vector<50x2xf32>
    %c1 = arith.constant 1 : index
    %c0_4 = arith.constant 0 : index
    %c0_5 = arith.constant 0 : index
    %4 = vector.load %arg2[%c1, %c0_4, %c0_5] : memref<3x50x17xf32, #tpu.memory_space<vmem>>, vector<1x50x17xf32>
    %5 = vector.shape_cast %4 : vector<1x50x17xf32> to vector<50x17xf32>
    %cst_6 = arith.constant dense<0.000000e+00> : vector<50x2xf32>
    %6 = tpu.matmul %5, %0, %cst_6 {dimension_numbers = #tpu.dot_dimension_numbers<[1], [0], [0], [1], [0, 0, 1, 1], [], []>} : vector<50x17xf32>, vector<17x2xf32>, vector<50x2xf32> -> vector<50x2xf32>
    %7 = arith.maximumf %3, %6 : vector<50x2xf32>
    %c2 = arith.constant 2 : index
    %c0_7 = arith.constant 0 : index
    %c0_8 = arith.constant 0 : index
    %8 = vector.load %arg2[%c2, %c0_7, %c0_8] : memref<3x50x17xf32, #tpu.memory_space<vmem>>, vector<1x50x17xf32>
    %9 = vector.shape_cast %8 : vector<1x50x17xf32> to vector<50x17xf32>
    %cst_9 = arith.constant dense<0.000000e+00> : vector<50x2xf32>
    %10 = tpu.matmul %9, %0, %cst_9 {dimension_numbers = #tpu.dot_dimension_numbers<[1], [0], [0], [1], [0, 0, 1, 1], [], []>} : vector<50x17xf32>, vector<17x2xf32>, vector<50x2xf32> -> vector<50x2xf32>
    %11 = arith.maximumf %7, %10 : vector<50x2xf32>
    %cst_10 = arith.constant 3.000000e-01 : f32
    %12 = vector.broadcast %cst_10 : f32 to vector<50x2xf32>
    %13 = arith.mulf %12, %11 : vector<50x2xf32>
    %14 = arith.maximumf %11, %13 : vector<50x2xf32>
    %c0_11 = arith.constant 0 : index
    %c0_12 = arith.constant 0 : index
    %15 = vector.load %arg3[%c0_11, %c0_12] : memref<3x50xf32, #tpu.memory_space<vmem>>, vector<3x50xf32>
    %cst_13 = arith.constant dense<0.000000e+00> : vector<3x2xf32>
    %16 = tpu.matmul %15, %14, %cst_13 {dimension_numbers = #tpu.dot_dimension_numbers<[1], [0], [0], [1], [0, 0, 1, 1], [], []>} : vector<3x50xf32>, vector<50x2xf32>, vector<3x2xf32> -> vector<3x2xf32>
    %c0_14 = arith.constant 0 : index
    %c0_15 = arith.constant 0 : index
    %17 = vector.load %arg4[%c0_14, %c0_15] : memref<3x1xf32, #tpu.memory_space<vmem>>, vector<3x1xf32>
    %18 = vector.broadcast %17 : vector<3x1xf32> to vector<3x2xf32>
    %19 = arith.addf %16, %18 : vector<3x2xf32>
    %c0_16 = arith.constant 0 : index
    %c0_17 = arith.constant 0 : index
    %20 = vector.load %arg5[%c0_16, %c0_17] : memref<3x2xf32, #tpu.memory_space<vmem>>, vector<3x2xf32>
    tpu.vector_store %arg5[%c0_16, %c0_17], %19 {strides = array<i32>} : memref<3x2xf32, #tpu.memory_space<vmem>>, vector<3x2xf32>,
    return
  }
  func.func @transform_0(%arg0: i32) -> (i32, i32) {
    %c0_i32 = arith.constant 0 : i32
    %c0_i32_0 = arith.constant 0 : i32
    return %c0_i32, %arg0 : i32, i32
  }
  func.func @transform_1(%arg0: i32) -> (i32, i32, i32) {
    %c0_i32 = arith.constant 0 : i32
    %c0_i32_0 = arith.constant 0 : i32
    %c0_i32_1 = arith.constant 0 : i32
    %c0_i32_2 = arith.constant 0 : i32
    return %c0_i32, %c0_i32_0, %c0_i32_1 : i32, i32, i32
  }
  func.func @transform_2(%arg0: i32) -> (i32, i32) {
    %c0_i32 = arith.constant 0 : i32
    %c0_i32_0 = arith.constant 0 : i32
    %c0_i32_1 = arith.constant 0 : i32
    return %c0_i32, %c0_i32_0 : i32, i32
  }
  func.func @transform_3(%arg0: i32) -> (i32, i32) {
    %c0_i32 = arith.constant 0 : i32
    %c0_i32_0 = arith.constant 0 : i32
    %c0_i32_1 = arith.constant 0 : i32
    return %c0_i32, %c0_i32_0 : i32, i32
  }
  func.func @transform_4(%arg0: i32) -> (i32, i32) {
    %c0_i32 = arith.constant 0 : i32
    %c0_i32_0 = arith.constant 0 : i32
    return %c0_i32, %arg0 : i32, i32
  }
}

</mosaic_0001>

<bundles_post_ra>
// kernel: simple_conv_encoder.1
= control target key start
LH: loop header
LB: loop body
LE: loop exit
PB: predicated region body
PF: predicated region fallthrough
CT: control target
= control target key end

     0   :  { %v733_v0 = vmov 0.0|0.0   ;;  %vm734_vm0 = vmmov 0   ;;  %v735_v4 = vmov 0.0   ;;  %vm49_vm1 = vcmask 1040384   ;;  %s927_s0 = inlined_call_operand.vmem [shape: f32[17,2], index: 0, kind: input, shape index: {}]   ;;  %s928_s1 = inlined_call_operand.vmem [shape: f32[3,50,17], index: 1, kind: input, shape index: {}]   ;;  %s929_s3 = inlined_call_operand.vmem [shape: f32[3,1], index: 3, kind: input, shape index: {}]   ;;  %s930_s2 = inlined_call_operand.vmem [shape: f32[3,50], index: 2, kind: input, shape index: {}]   ;;  %s931_s4 = inlined_call_operand.vmem [shape: f32[3,2], index: 4, kind: output, shape index: {}]  }
   0x1   :  { %706 = vmatprep.subr.bf16.mxu0 %v733_v0  ;;  %724 = vmatprep.subr.bf16.mxu1 %v733_v0  ;;  %v17_v1 = vld [vmem:[%s927_s0] sm:$0xff]  ;;  %v18_v2 = vld [vmem:[%s927_s0 + $0x8] sm:$0xff]  ;;  %v19_v5 = vld [vmem:[%s927_s0 + $0x10] sm:$0x1]  ;;  %vm27_vm2 = vcmask 138240   ;;  %v736_v27 = vmov 0  }
   0x2   :  { %v707_v3 = vpack.c.bf16 %v18_v2, %v17_v1  ;;  %614 = vmatprep.mubr.msk.f32.mxu0 %vm734_vm0, %v735_v4  ;;  %626 = vmatprep.mubr.msk.f32.mxu1 %vm734_vm0, %v735_v4  ;;  %v20_v6 = vld [vmem:[%s928_s1] sm:$0xff]  ;;  %v21_v8 = vld [vmem:[%s928_s1 + $0x8] sm:$0xff]  ;;  %v22_v10 = vld [vmem:[%s928_s1 + $0x10] sm:$0xff]  ;;  %vm450_vm3 = vcmask 1041408   ;;  %vm446_vm4 = vcmask 408576   ;;  %vm524_vm5 = vcmask 10240  }
   0x3   :  { %v24_v7 = vld [vmem:[%s928_s1 + $0x20] sm:$0xff]  ;;  %v25_v9 = vld [vmem:[%s928_s1 + $0x28] sm:$0xff]  ;;  %v26_v11 = vld [vmem:[%s928_s1 + $0x30] sm:$0x3]  ;;  %732 = vset.pattern.permute.xlu0 %v736_v27 }
   0x4   :  { %708 = vmatpush3.bf16.msra.mxu0 %v707_v3  ;;  %726 = vmatpush3.bf16.msra.mxu1 %v707_v3  ;;  %v23_v12 = vld [vmem:[%s928_s1 + $0x18] sm:$0xff]  ;;  %v539_v14 = vld [vmem:[%s928_s1 + $0x40] sm:$0xff]  ;;  %v553_v15 = vld [vmem:[%s928_s1 + $0x70] sm:$0xff] }
   0x5   :  { %612 = vmatprep.subr.mxu0 %v735_v4  ;;  %725 = vmatprep.subr.mxu1 %v735_v4  ;;  %v538_v13 = vld [vmem:[%s928_s1 + $0x38] sm:$0xff]  ;;  %v540_v16 = vld [vmem:[%s928_s1 + $0x48] sm:$0xff]  ;;  %v541_v18 = vld [vmem:[%s928_s1 + $0x50] sm:$0xff] }
   0x6   :  { %v554_v17 = vld [vmem:[%s928_s1 + $0x78] sm:$0xff]  ;;  %v555_v19 = vld [vmem:[%s928_s1 + $0x80] sm:$0xff]  ;;  %v556_v21 = vld [vmem:[%s928_s1 + $0x88] sm:$0xff] }
   0x7   :  { %v542_v20 = vld [vmem:[%s928_s1 + $0x58] sm:$0xff]  ;;  %v543_v22 = vld [vmem:[%s928_s1 + $0x60] sm:$0xff]  ;;  %v557_v23 = vld [vmem:[%s928_s1 + $0x90] sm:$0xff] }
   0x8   :  { %613 = vmatpush3.msk.msra.mxu0 %vm49_vm1, %v19_v5  ;;  %727 = vmatpush3.msk.msra.mxu1 %vm49_vm1, %v19_v5  ;;  %v544_v24 = vld [vmem:[%s928_s1 + $0x68] sm:$0x3]  ;;  %v558_v25 = vld [vmem:[%s928_s1 + $0x98] sm:$0xff]  ;;  %v559_v26 = vld [vmem:[%s928_s1 + $0xa0] sm:$0x3] }
   0x9   :  { %615 = vmatmul.mubr.msk.f32.vlgmr.msra.gmra.mrb[0].mxu0 %vm27_vm2, %v20_v6  ;;  %627 = vmatmul.mubr.msk.f32.vlgmr.msra.gmra.mrb[0].mxu1 %vm27_vm2, %v24_v7  ;;  %v440_v28 = vld [vmem:[%s929_s3] sm:$0x7] }
   0xa   :  { %617 = vmatprep.mubr.msk.f32.mxu0 %vm734_vm0, %v735_v4  ;;  %629 = vmatprep.mubr.msk.f32.mxu1 %vm734_vm0, %v735_v4 }
   0xb   :  { %709 = vmatprep.subr.bf16.mxu1 %v733_v0  ;;  %712 = vmatprep.subr.bf16.mxu0 %v733_v0 }
   0xc   :  { %711 = vmatpush3.bf16.msra.mxu1 %v707_v3  ;;  %714 = vmatpush3.bf16.msra.mxu0 %v707_v3 }
   0xd   :  { %618 = vmatmul.mubr.msk.f32.gmra.mrb[2].mxu0 %vm27_vm2, %v21_v8  ;;  %630 = vmatmul.mubr.msk.f32.gmra.mrb[2].mxu1 %vm27_vm2, %v25_v9 }
   0xe   :  { %620 = vmatprep.mubr.msk.f32.mxu0 %vm734_vm0, %v735_v4  ;;  %632 = vmatprep.mubr.msk.f32.mxu1 %vm734_vm0, %v735_v4 }
   0xf   :  { %639 = vmatprep.subr.mxu1 %v735_v4  ;;  %666 = vmatprep.subr.mxu0 %v735_v4 }
  0x10   :  { %640 = vmatpush3.msk.msra.mxu1 %vm49_vm1, %v19_v5  ;;  %667 = vmatpush3.msk.msra.mxu0 %vm49_vm1, %v19_v5 }
  0x11   :  { %621 = vmatmul.mubr.msk.f32.gmra.mrb[4].mxu0 %vm27_vm2, %v22_v10  ;;  %633 = vmatmul.mubr.msk.f32.gmra.mrb[4].mxu1 %vm27_vm2, %v26_v11 }
  0x12   :  { %623 = vmatprep.mubr.msk.f32.mxu0 %vm734_vm0, %v735_v4  ;;  %641 = vmatprep.mubr.msk.f32.mxu1 %vm734_vm0, %v735_v4 }
  0x13   :  { %715 = vmatprep.subr.bf16.mxu1 %v733_v0  ;;  %443 = vperm.xlu0 %732, %v440_v28  }
  0x15   :  { %624 = vmatmul.mubr.msk.f32.gmra.mrb[6].mxu0 %vm27_vm2, %v23_v12  ;;  %642 = vmatmul.mubr.msk.f32.vlgmr.msra.gmra.mrb[6].mxu1 %vm27_vm2, %v538_v13 }
  0x16   :  { %644 = vmatprep.mubr.msk.f32.mxu1 %vm734_vm0, %v735_v4  ;;  %668 = vmatprep.mubr.msk.f32.mxu0 %vm734_vm0, %v735_v4 }
  0x19   :  { %645 = vmatmul.mubr.msk.f32.gmra.mrb[8].mxu1 %vm27_vm2, %v539_v14  ;;  %669 = vmatmul.mubr.msk.f32.vlgmr.msra.gmra.mrb[8].mxu0 %vm27_vm2, %v553_v15 }
  0x1a   :  { %647 = vmatprep.mubr.msk.f32.mxu1 %vm734_vm0, %v735_v4  ;;  %671 = vmatprep.mubr.msk.f32.mxu0 %vm734_vm0, %v735_v4 }
  0x1d   :  { %648 = vmatmul.mubr.msk.f32.gmra.mrb[10].mxu1 %vm27_vm2, %v540_v16  ;;  %672 = vmatmul.mubr.msk.f32.gmra.mrb[10].mxu0 %vm27_vm2, %v554_v17 }
  0x1e   :  { %650 = vmatprep.mubr.msk.f32.mxu1 %vm734_vm0, %v735_v4  ;;  %674 = vmatprep.mubr.msk.f32.mxu0 %vm734_vm0, %v735_v4 }
  0x21   :  { %651 = vmatmul.mubr.msk.f32.gmra.mrb[12].mxu1 %vm27_vm2, %v541_v18  ;;  %675 = vmatmul.mubr.msk.f32.gmra.mrb[12].mxu0 %vm27_vm2, %v555_v19 }
  0x22   :  { %653 = vmatprep.mubr.msk.f32.mxu1 %vm734_vm0, %v735_v4  ;;  %677 = vmatprep.mubr.msk.f32.mxu0 %vm734_vm0, %v735_v4 }
  0x25   :  { %654 = vmatmul.mubr.msk.f32.gmra.mrb[14].mxu1 %vm27_vm2, %v542_v20  ;;  %678 = vmatmul.mubr.msk.f32.gmra.mrb[14].mxu0 %vm27_vm2, %v556_v21 }
  0x26   :  { %656 = vmatprep.mubr.msk.f32.mxu1 %vm734_vm0, %v735_v4  ;;  %680 = vmatprep.mubr.msk.f32.mxu0 %vm734_vm0, %v735_v4 }
  0x29   :  { %657 = vmatmul.mubr.msk.f32.gmra.mrb[16].mxu1 %vm27_vm2, %v543_v22  ;;  %681 = vmatmul.mubr.msk.f32.gmra.mrb[16].mxu0 %vm27_vm2, %v557_v23 }
  0x2a   :  { %659 = vmatprep.mubr.msk.f32.mxu1 %vm734_vm0, %v735_v4  ;;  %683 = vmatprep.mubr.msk.f32.mxu0 %vm734_vm0, %v735_v4 }
  0x2d   :  { %660 = vmatmul.mubr.msk.f32.gmra.mrb[18].mxu1 %vm27_vm2, %v544_v24  ;;  %684 = vmatmul.mubr.msk.f32.gmra.mrb[18].mxu0 %vm27_vm2, %v558_v25 }
  0x2e   :  { %686 = vmatprep.mubr.msk.f32.mxu0 %vm734_vm0, %v735_v4  ;;  %703 = vmatprep.mubr.msk.f32.mxu1 %vm734_vm0, %v735_v4 }
  0x31   :  { %687 = vmatmul.mubr.msk.f32.gmra.mrb[20].mxu0 %vm27_vm2, %v559_v26 }
  0xdc   :  { %v119_v29 = vpop.f32.mrb[0].mxu0  ;;  %v139_v30 = vpop.f32.mrb[0].mxu1 }
  0xdd   :  { %v616_v31 = vpop.f32.mrb[1].mxu0  ;;  %v628_v32 = vpop.f32.mrb[1].mxu1 }
  0xe0   :  { %v124_v33 = vpop.f32.mrb[2].mxu0  ;;  %v144_v34 = vpop.f32.mrb[2].mxu1 }
  0xe1   :  { %v619_v35 = vpop.f32.mrb[3].mxu0  ;;  %v631_v36 = vpop.f32.mrb[3].mxu1 }
  0xe4   :  { %v129_v37 = vpop.f32.mrb[4].mxu0  ;;  %v915_v38 = vpop.f32.mrb[4].mxu1 }
  0xe5   :  { %v622_v39 = vpop.f32.mrb[5].mxu0  ;;  %v634_v40 = vpop.f32.mrb[5].mxu1 }
  0xe8   :  { %v134_v41 = vpop.f32.mrb[6].mxu0  ;;  %v248_v42 = vpop.f32.mrb[6].mxu1 }
  0xe9   :  { %v282_v43 = vmax.f32 %v119_v29, %v248_v42  ;;  %v625_v44 = vpop.f32.mrb[7].mxu0  ;;  %v643_v45 = vpop.f32.mrb[7].mxu1 }
  0xec   :  { %v253_v46 = vpop.f32.mrb[8].mxu1  ;;  %v384_v47 = vpop.f32.mrb[8].mxu0 }
  0xed   :  { %v283_v48 = vmax.f32 %v124_v33, %v253_v46  ;;  %v418_v49 = vmax.f32 %v282_v43, %v384_v47  ;;  %v670_v50 = vpop.f32.mrb[9].mxu0  ;;  %v646_v51 = vpop.f32.mrb[9].mxu1 }
  0xef   :  { %v425_v54 = vmul.f32 0.3, %v418_v49 }
  0xf0   :  { %v258_v52 = vpop.f32.mrb[10].mxu1  ;;  %v389_v53 = vpop.f32.mrb[10].mxu0 }
  0xf1   :  { %v284_v55 = vmax.f32 %v129_v37, %v258_v52  ;;  %v419_v56 = vmax.f32 %v283_v48, %v389_v53  ;;  %v673_v57 = vpop.f32.mrb[11].mxu0  ;;  %v649_v58 = vpop.f32.mrb[11].mxu1  ;;  %v432_v62 = vmax.f32 %v418_v49, %v425_v54 }
  0xf3   :  { %v426_v59 = vmul.f32 0.3, %v419_v56 }
  0xf4   :  { %v263_v60 = vpop.f32.mrb[12].mxu1  ;;  %v394_v61 = vpop.f32.mrb[12].mxu0 }
  0xf5   :  { %v433_v63 = vmax.f32 %v419_v56, %v426_v59  ;;  %v285_v1 = vmax.f32 %v134_v41, %v263_v60  ;;  %v420_v2 = vmax.f32 %v284_v55, %v394_v61  ;;  %v676_v3 = vpop.f32.mrb[13].mxu0  ;;  %v652_v5 = vpop.f32.mrb[13].mxu1 }
  0xf7   :  { %v716_v6 = vpack.c.bf16 %v433_v63, %v432_v62  ;;  %v427_v9 = vmul.f32 0.3, %v420_v2 }
  0xf8   :  { %v268_v7 = vpop.f32.mrb[14].mxu1  ;;  %v399_v8 = vpop.f32.mrb[14].mxu0 }
  0xf9   :  { %v286_v10 = vmax.f32 %v139_v30, %v268_v7  ;;  %v421_v11 = vmax.f32 %v285_v1, %v399_v8  ;;  %v679_v12 = vpop.f32.mrb[15].mxu0  ;;  %717 = vmatpush3.bf16.msra.mxu1 %v716_v6  ;;  %v655_v13 = vpop.f32.mrb[15].mxu1  ;;  %v434_v17 = vmax.f32 %v420_v2, %v427_v9 }
  0xfa   :  { %718 = vmatprep.subr.bf16.mxu1 %v733_v0 }
  0xfb   :  { %v428_v14 = vmul.f32 0.3, %v421_v11 }
  0xfc   :  { %v273_v15 = vpop.f32.mrb[16].mxu1  ;;  %v404_v16 = vpop.f32.mrb[16].mxu0 }
  0xfd   :  { %v435_v18 = vmax.f32 %v421_v11, %v428_v14  ;;  %v287_v19 = vmax.f32 %v144_v34, %v273_v15  ;;  %v422_v20 = vmax.f32 %v286_v10, %v404_v16  ;;  %v682_v21 = vpop.f32.mrb[17].mxu0  ;;  %v658_v22 = vpop.f32.mrb[17].mxu1 }
  0xff   :  { %v719_v23 = vpack.c.bf16 %v435_v18, %v434_v17  ;;  %v429_v26 = vmul.f32 0.3, %v422_v20 }
 0x100   :  { %v278_v24 = vpop.f32.mrb[18].mxu1  ;;  %v409_v25 = vpop.f32.mrb[18].mxu0 }
 0x101   :  { %v288_v27 = vmax.f32 %v915_v38, %v278_v24  ;;  %v423_v28 = vmax.f32 %v287_v19, %v409_v25  ;;  %v685_v29 = vpop.f32.mrb[19].mxu0  ;;  %720 = vmatpush3.bf16.msra.mxu1 %v719_v23  ;;  %v661_v30 = vpop.f32.mrb[19].mxu1  ;;  %v436_v33 = vmax.f32 %v422_v20, %v429_v26  ;;  %v439_v38 = vld [vmem:[%s930_s2] sm:$0x7] }
 0x102   :  { %721 = vmatprep.subr.bf16.mxu1 %v733_v0  ;;  %v444_v0 = vpop.permute.xlu0 %443 }
 0x103   :  { %v430_v31 = vmul.f32 0.3, %v423_v28 }
 0x104   :  { %v414_v32 = vpop.f32.mrb[20].mxu0 }
 0x105   :  { %v437_v35 = vmax.f32 %v423_v28, %v430_v31  ;;  %v424_v34 = vmax.f32 %v288_v27, %v414_v32  ;;  %v688_v36 = vpop.f32.mrb[21].mxu0 }
 0x107   :  { %v722_v37 = vpack.c.bf16 %v437_v35, %v436_v33  ;;  %v431_v39 = vmul.f32 0.3, %v424_v34 }
 0x109   :  { %723 = vmatpush3.bf16.msra.mxu1 %v722_v37  ;;  %v438_v40 = vmax.f32 %v424_v34, %v431_v39 }
 0x10a   :  { %701 = vmatprep.subr.mxu1 %v735_v4 }
 0x10d   :  { %702 = vmatpush3.msk.msra.mxu1 %vm450_vm3, %v438_v40 }
 0x10e   :  { %704 = vmatmul.mubr.msk.f32.vlgmr.msra.gmra.mrb[20].mxu1 %vm446_vm4, %v439_v38 }
 0x1e1   :  { %v520_v41 = vpop.f32.mrb[20].mxu1 }
 0x1e2   :  { %v521_v42 = vadd.f32 %v520_v41, %v444_v0  ;;  %v705_v43 = vpop.f32.mrb[21].mxu1 }
 0x1e4   :  { %525 = vst.msk [vmem:[%s931_s4] sm:$0x7] %vm524_vm5, %v521_v42 }

</bundles_post_ra>
